<compile_context>
chip_gen: v5e
topology: v5e:2x2
jax: 0.10.0
libtpu: 0.0.40
codegen_flags: <defaults>
</compile_context>

<pallas_src>
import jax
import jax.numpy as jnp
from jax.experimental import pallas as pl
from jax.experimental.pallas import tpu as pltpu

NUM_CLASSES = 2                         # config.dataset.num_classes (binary fg/bg head)
IGNORE_INDEX = 255                      # config.dataset.semantic_ignore_index
MAX_ROWS = 2048                         # max sublane rows per block (scaled by B)
_INPUT_VMEM_BUDGET = 16 * 1024 * 1024   # double-buffered input blocks budget


def _detect_num_tensorcores():
    """2 on chips with two TensorCores (v7x), 1 on v5e/v6e; safe fallback 1."""
    try:
        info = pltpu.get_tpu_info()
    except Exception:
        return 1
    for name in ("num_cores", "cores_per_chip", "num_tensorcores",
                 "tensorcores_per_chip", "core_count"):
        v = getattr(info, name, None)
        if isinstance(v, int) and v >= 1:
            return min(v, 2)
    return 1


def _make_kernel(batch, rows, total_rows, tiles_per_core, softplus_dtype):
    b_float = float(batch)
    groups = rows // 8          # row-vreg groups folded in-register

    def kernel(pred_ref, lab_ref, out_ref,
               bg_sum_acc, fg_sum_acc, bg_cnt_acc, fg_cnt_acc, match_acc):
        c = pl.program_id(0)    # core / row-range split
        j = pl.program_id(1)    # tile within this core's row range

        @pl.when(j == 0)
        def _init():
            bg_sum_acc[...] = jnp.zeros_like(bg_sum_acc)
            fg_sum_acc[...] = jnp.zeros_like(fg_sum_acc)
            bg_cnt_acc[...] = jnp.zeros_like(bg_cnt_acc)
            fg_cnt_acc[...] = jnp.zeros_like(fg_cnt_acc)
            match_acc[...] = jnp.zeros_like(match_acc)

        p = pred_ref[...].astype(jnp.float32)      # (B, rows, 128)
        lab = lab_ref[...]                         # (B, rows, 128) int32

        # 2-class log-softmax of cat((1 - p, p), dim=1):
        #   -log_softmax[0] = softplus(2p - 1) = sp
        #   -log_softmax[1] = sp - (2p - 1)
        d = 2.0 * p - 1.0
        dc = d.astype(softplus_dtype)
        sp = (jnp.maximum(dc, 0.0) +
              jnp.log(1.0 + jnp.exp(-jnp.abs(dc)))).astype(jnp.float32)

        # masked_fill(labels >= num_classes, 255) + bg/fg split, in-kernel.
        is_bg = lab == 0
        is_fg = jnp.logical_and(lab != 0, lab < NUM_CLASSES)

        # Fold the batch axis with cheap VPU adds -> per-position (rows, 128).
        bg_sum_pos = jnp.sum(jnp.where(is_bg, sp, 0.0), axis=0)
        fg_sum_pos = jnp.sum(jnp.where(is_fg, sp - d, 0.0), axis=0)
        bg_cnt_pos = jnp.sum(jnp.where(is_bg, 1.0, 0.0), axis=0)
        fg_cnt_pos = jnp.sum(jnp.where(is_fg, 1.0, 0.0), axis=0)
        n_pos = jnp.sum(jnp.where(p > 0.5, 1.0, 0.0), axis=0)

        # Rows past the true pixel-row count (partial tail tile / clamped
        # duplicate tile) are neutralized per position, after the batch fold.
        tile = c * tiles_per_core + j
        rows_left = total_rows - tile * rows
        row_id = jax.lax.broadcasted_iota(jnp.int32, (rows, 128), 0)
        live = row_id < rows_left
        bg_sum_pos = jnp.where(live, bg_sum_pos, 0.0)
        fg_sum_pos = jnp.where(live, fg_sum_pos, 0.0)
        bg_cnt_pos = jnp.where(live, bg_cnt_pos, 0.0)
        fg_cnt_pos = jnp.where(live, fg_cnt_pos, 0.0)

        # Accuracy reproduces torch's eq(pred>0.5 [B,1,H,W], labels [B,H,W])
        # cross-batch broadcast algebraically: at a spatial position each fg
        # label contributes n_pos matches, each bg label (B - n_pos).
        match_pos = n_pos * fg_cnt_pos + (b_float - n_pos) * bg_cnt_pos

        def fold(x):   # (rows, 128) -> (8, 128): pure vreg adds (no XLU)
            return jnp.sum(x.reshape(groups, 8, 128), axis=0)

        bg_sum_acc[...] += fold(bg_sum_pos)
        fg_sum_acc[...] += fold(fg_sum_pos)
        bg_cnt_acc[...] += fold(bg_cnt_pos)
        fg_cnt_acc[...] += fold(fg_cnt_pos)
        match_acc[...] += fold(match_pos)

        @pl.when(j == tiles_per_core - 1)
        def _finalize():
            out_ref[0, 0] = bg_sum_acc[...]
            out_ref[0, 1] = fg_sum_acc[...]
            out_ref[0, 2] = bg_cnt_acc[...]
            out_ref[0, 3] = fg_cnt_acc[...]
            out_ref[0, 4] = match_acc[...]

    return kernel


def softmax_classifier_forward(datas, targets=None, *, max_rows=MAX_ROWS,
                               num_cores=None, softplus_dtype=jnp.float32):
    """JAX/Pallas equivalent of SoftmaxClassifier.forward."""
    semantic_pred = datas['div1']              # [B, 1, H, W]
    contour_pred = datas['contour_div1']       # [B, 1, H, W]
    outputs = {'semantic_pred': semantic_pred, 'contour_pred': contour_pred,
               'partedCE_loss': None, 'accuracy': None}

    targets = targets if targets is not None else {}
    labels = targets.get('semantic_label', None)
    if labels is None:
        return outputs

    B = semantic_pred.shape[0]
    H, W = semantic_pred.shape[-2], semantic_pred.shape[-1]
    n = H * W

    # pred keeps its input dtype (f32 or bf16); the kernel upcasts per-vreg.
    pred = semantic_pred.reshape(B, n)

    lab = labels
    if lab.ndim == 4 and lab.shape[1] == 1:    # mirrors squeeze_(1)
        lab = lab[:, 0]
    lab = lab.reshape(B, n).astype(jnp.int32)  # raw labels; classified in-kernel

    # Pad the pixel axis to a multiple of 8*128 (one full f32 vreg tile) so
    # blocks tile cleanly; padded labels carry the ignore value.
    n_pad = -(-n // 1024) * 1024
    if n_pad != n:
        pred = jnp.pad(pred, ((0, 0), (0, n_pad - n)))
        lab = jnp.pad(lab, ((0, 0), (0, n_pad - n)),
                      constant_values=IGNORE_INDEX)
    total_rows = n_pad // 128
    pred = pred.reshape(B, total_rows, 128)
    lab = lab.reshape(B, total_rows, 128)

    # Biggest block that keeps double-buffered inputs under the VMEM budget.
    bytes_per_row = 2 * 2 * 128 * 4 * B        # 2 inputs x 2 buffers x 4B/px
    rows_cap = min(int(max_rows), _INPUT_VMEM_BUDGET // bytes_per_row)
    rows_cap = max(8, (rows_cap // 8) * 8)
    rows = total_rows if total_rows <= rows_cap else rows_cap
    num_tiles = -(-total_rows // rows)

    ncores = int(num_cores) if num_cores is not None else _detect_num_tensorcores()
    ncores = max(1, min(ncores, num_tiles))
    tiles_per_core = -(-num_tiles // ncores)
    last_tile = num_tiles - 1

    def in_map(c, j):
        # Clamp so a core with fewer tiles re-reads the last (fully masked) one.
        return (0, jnp.minimum(c * tiles_per_core + j, last_tile), 0)

    res = pl.pallas_call(
        _make_kernel(B, rows, total_rows, tiles_per_core, softplus_dtype),
        out_shape=jax.ShapeDtypeStruct((ncores, 5, 8, 128), jnp.float32),
        grid_spec=pltpu.PrefetchScalarGridSpec(
            num_scalar_prefetch=0,
            grid=(ncores, tiles_per_core),
            in_specs=[pl.BlockSpec((B, rows, 128), in_map),
                      pl.BlockSpec((B, rows, 128), in_map)],
            out_specs=pl.BlockSpec((1, 5, 8, 128), lambda c, j: (c, 0, 0, 0)),
            scratch_shapes=[pltpu.VMEM((8, 128), jnp.float32)
                            for _ in range(5)],
        ),
        compiler_params=pltpu.CompilerParams(
            dimension_semantics=("parallel", "arbitrary"),
            vmem_limit_bytes=32 * 1024 * 1024),
    )(pred, lab)

    totals = jnp.sum(res, axis=(0, 2, 3))      # (5,) lane-packed scalars
    bg_sum, fg_sum = totals[0], totals[1]
    bg_cnt, fg_cnt = totals[2], totals[3]
    match_sum = totals[4]

    # NaN on empty bg/fg/valid sets matches PyTorch CrossEntropyLoss / mean().
    outputs['partedCE_loss'] = bg_sum / bg_cnt + fg_sum / fg_cnt
    outputs['accuracy'] = match_sum / ((bg_cnt + fg_cnt) * B)
    return outputs


def _reference(semantic_pred, labels):
    """Pure-JAX reference mirroring the PyTorch semantics (for verification)."""
    labels = jnp.where(labels >= NUM_CLASSES, IGNORE_INDEX, labels)
    p = semantic_pred[:, 0].astype(jnp.float32)       # (B, H, W)
    lse = jnp.logaddexp(1.0 - p, p)
    nll0 = lse - (1.0 - p)
    nll1 = lse - p
    is_bg = labels == 0
    is_fg = (labels != 0) & (labels != IGNORE_INDEX)
    parted = (jnp.sum(jnp.where(is_bg, nll0, 0.0)) / jnp.sum(is_bg)
              + jnp.sum(jnp.where(is_fg, nll1, 0.0)) / jnp.sum(is_fg))

    pred_bin = (p > 0.5).astype(jnp.int32)                              # (B,H,W)
    match = (pred_bin[:, None] == labels[None]).astype(jnp.float32)     # (B,B,H,W)
    valid = (labels != IGNORE_INDEX).astype(jnp.float32)[None]          # (1,B,H,W)
    acc = jnp.sum(match * valid) / (p.shape[0] * jnp.sum(labels != IGNORE_INDEX))
    return parted, acc


def _run_case(key, batch, height, width, **kwargs):
    k1, k2, k3 = jax.random.split(key, 3)
    semantic_pred = jax.random.uniform(k1, (batch, 1, height, width),
                                       dtype=jnp.float32)
    contour_pred = jax.random.uniform(k2, (batch, 1, height, width),
                                      dtype=jnp.float32)
    # labels in [0, 4): values >= num_classes exercise the masked_fill path.
    semantic_label = jax.random.randint(k3, (batch, height, width), 0, 4,
                                        dtype=jnp.int32)

    out = softmax_classifier_forward(
        {'div1': semantic_pred, 'contour_div1': contour_pred},
        {'semantic_label': semantic_label}, **kwargs)
    loss = jax.block_until_ready(out['partedCE_loss'])
    acc = jax.block_until_ready(out['accuracy'])

    ref_loss, ref_acc = _reference(semantic_pred, semantic_label)
    assert jnp.allclose(loss, ref_loss, atol=1e-5, rtol=1e-4), (loss, ref_loss)
    assert jnp.allclose(acc, ref_acc, atol=1e-5, rtol=1e-4), (acc, ref_acc)


if __name__ == "__main__":
    key = jax.random.PRNGKey(0)
    k_a, k_b = jax.random.split(key)
    # Module-sized example: B=2, 16x16 (single tile, auto TensorCore count).
    _run_case(k_a, batch=2, height=16, width=16)
    # Exercises pixel padding, multi-step accumulation, a partial tail tile and
    # a clamped (fully masked) duplicate tile on a forced 2-way core split
    # (correct on single-TC chips too: the leading axis just runs serially).
    _run_case(k_b, batch=3, height=92, width=92, max_rows=32, num_cores=2)
    print("KERNEL_OK")
</pallas_src>

<mosaic_0001>
module attributes {stable_mosaic.version = 11 : i64} {
  func.func @kernel(%arg0: i32, %arg1: i32, %arg2: memref<2x8x128xf32, #tpu.memory_space<vmem>>, %arg3: memref<2x8x128xi32, #tpu.memory_space<vmem>>, %arg4: memref<1x5x8x128xf32, #tpu.memory_space<vmem>>, %arg5: memref<8x128xf32, #tpu.memory_space<vmem>>, %arg6: memref<8x128xf32, #tpu.memory_space<vmem>>, %arg7: memref<8x128xf32, #tpu.memory_space<vmem>>, %arg8: memref<8x128xf32, #tpu.memory_space<vmem>>, %arg9: memref<8x128xf32, #tpu.memory_space<vmem>>) attributes {dimension_semantics = [#tpu.dimension_semantics<parallel>, #tpu.dimension_semantics<arbitrary>], iteration_bounds = array<i64: 1, 1>, scalar_prefetch = 0 : i64, scratch_operands = 5 : i64, tpu.core_type = #tpu.core_type<tc>, window_params = [{transform_indices = @transform_0, window_bounds = array<i64: 2, 8, 128>}, {transform_indices = @transform_1, window_bounds = array<i64: 2, 8, 128>}, {transform_indices = @transform_2, window_bounds = array<i64: 1, 5, 8, 128>}]} {
    %c0_i32 = arith.constant 0 : i32
    %0 = arith.cmpi eq, %arg1, %c0_i32 : i32
    %1 = arith.extui %0 : i1 to i32
    %c0_i32_0 = arith.constant 0 : i32
    %2 = arith.cmpi ne, %1, %c0_i32_0 : i32
    scf.if %2 {
      %cst_59 = arith.constant 0.000000e+00 : f32
      %95 = vector.broadcast %cst_59 : f32 to vector<8x128xf32>
      %c0_60 = arith.constant 0 : index
      %c0_61 = arith.constant 0 : index
      %96 = vector.load %arg5[%c0_60, %c0_61] : memref<8x128xf32, #tpu.memory_space<vmem>>, vector<8x128xf32>
      tpu.vector_store %arg5[%c0_60, %c0_61], %95 {strides = array<i32>} : memref<8x128xf32, #tpu.memory_space<vmem>>, vector<8x128xf32>,
      %cst_62 = arith.constant 0.000000e+00 : f32
      %97 = vector.broadcast %cst_62 : f32 to vector<8x128xf32>
      %c0_63 = arith.constant 0 : index
      %c0_64 = arith.constant 0 : index
      %98 = vector.load %arg6[%c0_63, %c0_64] : memref<8x128xf32, #tpu.memory_space<vmem>>, vector<8x128xf32>
      tpu.vector_store %arg6[%c0_63, %c0_64], %97 {strides = array<i32>} : memref<8x128xf32, #tpu.memory_space<vmem>>, vector<8x128xf32>,
      %cst_65 = arith.constant 0.000000e+00 : f32
      %99 = vector.broadcast %cst_65 : f32 to vector<8x128xf32>
      %c0_66 = arith.constant 0 : index
      %c0_67 = arith.constant 0 : index
      %100 = vector.load %arg7[%c0_66, %c0_67] : memref<8x128xf32, #tpu.memory_space<vmem>>, vector<8x128xf32>
      tpu.vector_store %arg7[%c0_66, %c0_67], %99 {strides = array<i32>} : memref<8x128xf32, #tpu.memory_space<vmem>>, vector<8x128xf32>,
      %cst_68 = arith.constant 0.000000e+00 : f32
      %101 = vector.broadcast %cst_68 : f32 to vector<8x128xf32>
      %c0_69 = arith.constant 0 : index
      %c0_70 = arith.constant 0 : index
      %102 = vector.load %arg8[%c0_69, %c0_70] : memref<8x128xf32, #tpu.memory_space<vmem>>, vector<8x128xf32>
      tpu.vector_store %arg8[%c0_69, %c0_70], %101 {strides = array<i32>} : memref<8x128xf32, #tpu.memory_space<vmem>>, vector<8x128xf32>,
      %cst_71 = arith.constant 0.000000e+00 : f32
      %103 = vector.broadcast %cst_71 : f32 to vector<8x128xf32>
      %c0_72 = arith.constant 0 : index
      %c0_73 = arith.constant 0 : index
      %104 = vector.load %arg9[%c0_72, %c0_73] : memref<8x128xf32, #tpu.memory_space<vmem>>, vector<8x128xf32>
      tpu.vector_store %arg9[%c0_72, %c0_73], %103 {strides = array<i32>} : memref<8x128xf32, #tpu.memory_space<vmem>>, vector<8x128xf32>,
    } else {
    }
    %c0 = arith.constant 0 : index
    %c0_1 = arith.constant 0 : index
    %c0_2 = arith.constant 0 : index
    %3 = vector.load %arg2[%c0, %c0_1, %c0_2] : memref<2x8x128xf32, #tpu.memory_space<vmem>>, vector<2x8x128xf32>
    %c0_3 = arith.constant 0 : index
    %c0_4 = arith.constant 0 : index
    %c0_5 = arith.constant 0 : index
    %4 = vector.load %arg3[%c0_3, %c0_4, %c0_5] : memref<2x8x128xi32, #tpu.memory_space<vmem>>, vector<2x8x128xi32>
    %cst = arith.constant 2.000000e+00 : f32
    %5 = vector.broadcast %cst : f32 to vector<2x8x128xf32>
    %6 = arith.mulf %5, %3 : vector<2x8x128xf32>
    %cst_6 = arith.constant 1.000000e+00 : f32
    %7 = vector.broadcast %cst_6 : f32 to vector<2x8x128xf32>
    %8 = arith.subf %6, %7 : vector<2x8x128xf32>
    %cst_7 = arith.constant 0.000000e+00 : f32
    %9 = vector.broadcast %cst_7 : f32 to vector<2x8x128xf32>
    %10 = arith.maximumf %8, %9 : vector<2x8x128xf32>
    %11 = math.absf %8 : vector<2x8x128xf32>
    %cst_8 = arith.constant 0.000000e+00 : f32
    %12 = vector.broadcast %cst_8 : f32 to vector<2x8x128xf32>
    %13 = arith.subf %12, %11 : vector<2x8x128xf32>
    %14 = math.exp %13 : vector<2x8x128xf32>
    %cst_9 = arith.constant 1.000000e+00 : f32
    %15 = vector.broadcast %cst_9 : f32 to vector<2x8x128xf32>
    %16 = arith.addf %15, %14 : vector<2x8x128xf32>
    %17 = math.log %16 : vector<2x8x128xf32>
    %18 = arith.addf %10, %17 : vector<2x8x128xf32>
    %c0_i32_10 = arith.constant 0 : i32
    %19 = vector.broadcast %c0_i32_10 : i32 to vector<2x8x128xi32>
    %20 = arith.cmpi eq, %4, %19 : vector<2x8x128xi32>
    %c0_i32_11 = arith.constant 0 : i32
    %21 = vector.broadcast %c0_i32_11 : i32 to vector<2x8x128xi32>
    %22 = arith.cmpi ne, %4, %21 : vector<2x8x128xi32>
    %c2_i32 = arith.constant 2 : i32
    %23 = vector.broadcast %c2_i32 : i32 to vector<2x8x128xi32>
    %24 = arith.cmpi slt, %4, %23 : vector<2x8x128xi32>
    %25 = arith.andi %22, %24 : vector<2x8x128xi1>
    %cst_12 = arith.constant 0.000000e+00 : f32
    %26 = vector.broadcast %cst_12 : f32 to vector<2x8x128xf32>
    %27 = arith.select %20, %18, %26 : vector<2x8x128xi1>, vector<2x8x128xf32>
    %cst_13 = arith.constant dense<0.000000e+00> : vector<8x128xf32>
    %28 = vector.multi_reduction <add>, %27, %cst_13 [0] : vector<2x8x128xf32> to vector<8x128xf32>
    %29 = arith.subf %18, %8 : vector<2x8x128xf32>
    %cst_14 = arith.constant 0.000000e+00 : f32
    %30 = vector.broadcast %cst_14 : f32 to vector<2x8x128xf32>
    %31 = arith.select %25, %29, %30 : vector<2x8x128xi1>, vector<2x8x128xf32>
    %cst_15 = arith.constant dense<0.000000e+00> : vector<8x128xf32>
    %32 = vector.multi_reduction <add>, %31, %cst_15 [0] : vector<2x8x128xf32> to vector<8x128xf32>
    %cst_16 = arith.constant 1.000000e+00 : f32
    %cst_17 = arith.constant 0.000000e+00 : f32
    %33 = vector.broadcast %cst_16 : f32 to vector<2x8x128xf32>
    %34 = vector.broadcast %cst_17 : f32 to vector<2x8x128xf32>
    %35 = arith.select %20, %33, %34 : vector<2x8x128xi1>, vector<2x8x128xf32>
    %cst_18 = arith.constant dense<0.000000e+00> : vector<8x128xf32>
    %36 = vector.multi_reduction <add>, %35, %cst_18 [0] : vector<2x8x128xf32> to vector<8x128xf32>
    %cst_19 = arith.constant 1.000000e+00 : f32
    %cst_20 = arith.constant 0.000000e+00 : f32
    %37 = vector.broadcast %cst_19 : f32 to vector<2x8x128xf32>
    %38 = vector.broadcast %cst_20 : f32 to vector<2x8x128xf32>
    %39 = arith.select %25, %37, %38 : vector<2x8x128xi1>, vector<2x8x128xf32>
    %cst_21 = arith.constant dense<0.000000e+00> : vector<8x128xf32>
    %40 = vector.multi_reduction <add>, %39, %cst_21 [0] : vector<2x8x128xf32> to vector<8x128xf32>
    %cst_22 = arith.constant 5.000000e-01 : f32
    %41 = vector.broadcast %cst_22 : f32 to vector<2x8x128xf32>
    %42 = arith.cmpf ogt, %3, %41 : vector<2x8x128xf32>
    %cst_23 = arith.constant 1.000000e+00 : f32
    %cst_24 = arith.constant 0.000000e+00 : f32
    %43 = vector.broadcast %cst_23 : f32 to vector<2x8x128xf32>
    %44 = vector.broadcast %cst_24 : f32 to vector<2x8x128xf32>
    %45 = arith.select %42, %43, %44 : vector<2x8x128xi1>, vector<2x8x128xf32>
    %cst_25 = arith.constant dense<0.000000e+00> : vector<8x128xf32>
    %46 = vector.multi_reduction <add>, %45, %cst_25 [0] : vector<2x8x128xf32> to vector<8x128xf32>
    %c1_i32 = arith.constant 1 : i32
    %47 = arith.muli %arg0, %c1_i32 : i32
    %48 = arith.addi %47, %arg1 : i32
    %c8_i32 = arith.constant 8 : i32
    %49 = arith.muli %48, %c8_i32 : i32
    %c8_i32_26 = arith.constant 8 : i32
    %50 = arith.subi %c8_i32_26, %49 : i32
    %51 = tpu.iota {dimensions = array<i32: 0>} : vector<8x128xi32>
    %52 = vector.broadcast %50 : i32 to vector<8x128xi32>
    %53 = arith.cmpi slt, %51, %52 : vector<8x128xi32>
    %cst_27 = arith.constant 0.000000e+00 : f32
    %54 = vector.broadcast %cst_27 : f32 to vector<8x128xf32>
    %55 = arith.select %53, %28, %54 : vector<8x128xi1>, vector<8x128xf32>
    %cst_28 = arith.constant 0.000000e+00 : f32
    %56 = vector.broadcast %cst_28 : f32 to vector<8x128xf32>
    %57 = arith.select %53, %32, %56 : vector<8x128xi1>, vector<8x128xf32>
    %cst_29 = arith.constant 0.000000e+00 : f32
    %58 = vector.broadcast %cst_29 : f32 to vector<8x128xf32>
    %59 = arith.select %53, %36, %58 : vector<8x128xi1>, vector<8x128xf32>
    %cst_30 = arith.constant 0.000000e+00 : f32
    %60 = vector.broadcast %cst_30 : f32 to vector<8x128xf32>
    %61 = arith.select %53, %40, %60 : vector<8x128xi1>, vector<8x128xf32>
    %62 = arith.mulf %46, %61 : vector<8x128xf32>
    %cst_31 = arith.constant 2.000000e+00 : f32
    %63 = vector.broadcast %cst_31 : f32 to vector<8x128xf32>
    %64 = arith.subf %63, %46 : vector<8x128xf32>
    %65 = arith.mulf %64, %59 : vector<8x128xf32>
    %66 = arith.addf %62, %65 : vector<8x128xf32>
    %c0_32 = arith.constant 0 : index
    %c0_33 = arith.constant 0 : index
    %67 = vector.load %arg5[%c0_32, %c0_33] : memref<8x128xf32, #tpu.memory_space<vmem>>, vector<8x128xf32>
    %68 = vector.shape_cast %55 : vector<8x128xf32> to vector<1x8x128xf32>
    %cst_34 = arith.constant dense<0.000000e+00> : vector<8x128xf32>
    %69 = vector.multi_reduction <add>, %68, %cst_34 [0] : vector<1x8x128xf32> to vector<8x128xf32>
    %70 = arith.addf %67, %69 : vector<8x128xf32>
    %c0_35 = arith.constant 0 : index
    %c0_36 = arith.constant 0 : index
    %71 = vector.load %arg5[%c0_35, %c0_36] : memref<8x128xf32, #tpu.memory_space<vmem>>, vector<8x128xf32>
    tpu.vector_store %arg5[%c0_35, %c0_36], %70 {strides = array<i32>} : memref<8x128xf32, #tpu.memory_space<vmem>>, vector<8x128xf32>,
    %c0_37 = arith.constant 0 : index
    %c0_38 = arith.constant 0 : index
    %72 = vector.load %arg6[%c0_37, %c0_38] : memref<8x128xf32, #tpu.memory_space<vmem>>, vector<8x128xf32>
    %73 = vector.shape_cast %57 : vector<8x128xf32> to vector<1x8x128xf32>
    %cst_39 = arith.constant dense<0.000000e+00> : vector<8x128xf32>
    %74 = vector.multi_reduction <add>, %73, %cst_39 [0] : vector<1x8x128xf32> to vector<8x128xf32>
    %75 = arith.addf %72, %74 : vector<8x128xf32>
    %c0_40 = arith.constant 0 : index
    %c0_41 = arith.constant 0 : index
    %76 = vector.load %arg6[%c0_40, %c0_41] : memref<8x128xf32, #tpu.memory_space<vmem>>, vector<8x128xf32>
    tpu.vector_store %arg6[%c0_40, %c0_41], %75 {strides = array<i32>} : memref<8x128xf32, #tpu.memory_space<vmem>>, vector<8x128xf32>,
    %c0_42 = arith.constant 0 : index
    %c0_43 = arith.constant 0 : index
    %77 = vector.load %arg7[%c0_42, %c0_43] : memref<8x128xf32, #tpu.memory_space<vmem>>, vector<8x128xf32>
    %78 = vector.shape_cast %59 : vector<8x128xf32> to vector<1x8x128xf32>
    %cst_44 = arith.constant dense<0.000000e+00> : vector<8x128xf32>
    %79 = vector.multi_reduction <add>, %78, %cst_44 [0] : vector<1x8x128xf32> to vector<8x128xf32>
    %80 = arith.addf %77, %79 : vector<8x128xf32>
    %c0_45 = arith.constant 0 : index
    %c0_46 = arith.constant 0 : index
    %81 = vector.load %arg7[%c0_45, %c0_46] : memref<8x128xf32, #tpu.memory_space<vmem>>, vector<8x128xf32>
    tpu.vector_store %arg7[%c0_45, %c0_46], %80 {strides = array<i32>} : memref<8x128xf32, #tpu.memory_space<vmem>>, vector<8x128xf32>,
    %c0_47 = arith.constant 0 : index
    %c0_48 = arith.constant 0 : index
    %82 = vector.load %arg8[%c0_47, %c0_48] : memref<8x128xf32, #tpu.memory_space<vmem>>, vector<8x128xf32>
    %83 = vector.shape_cast %61 : vector<8x128xf32> to vector<1x8x128xf32>
    %cst_49 = arith.constant dense<0.000000e+00> : vector<8x128xf32>
    %84 = vector.multi_reduction <add>, %83, %cst_49 [0] : vector<1x8x128xf32> to vector<8x128xf32>
    %85 = arith.addf %82, %84 : vector<8x128xf32>
    %c0_50 = arith.constant 0 : index
    %c0_51 = arith.constant 0 : index
    %86 = vector.load %arg8[%c0_50, %c0_51] : memref<8x128xf32, #tpu.memory_space<vmem>>, vector<8x128xf32>
    tpu.vector_store %arg8[%c0_50, %c0_51], %85 {strides = array<i32>} : memref<8x128xf32, #tpu.memory_space<vmem>>, vector<8x128xf32>,
    %c0_52 = arith.constant 0 : index
    %c0_53 = arith.constant 0 : index
    %87 = vector.load %arg9[%c0_52, %c0_53] : memref<8x128xf32, #tpu.memory_space<vmem>>, vector<8x128xf32>
    %88 = vector.shape_cast %66 : vector<8x128xf32> to vector<1x8x128xf32>
    %cst_54 = arith.constant dense<0.000000e+00> : vector<8x128xf32>
    %89 = vector.multi_reduction <add>, %88, %cst_54 [0] : vector<1x8x128xf32> to vector<8x128xf32>
    %90 = arith.addf %87, %89 : vector<8x128xf32>
    %c0_55 = arith.constant 0 : index
    %c0_56 = arith.constant 0 : index
    %91 = vector.load %arg9[%c0_55, %c0_56] : memref<8x128xf32, #tpu.memory_space<vmem>>, vector<8x128xf32>
    tpu.vector_store %arg9[%c0_55, %c0_56], %90 {strides = array<i32>} : memref<8x128xf32, #tpu.memory_space<vmem>>, vector<8x128xf32>,
    %c0_i32_57 = arith.constant 0 : i32
    %92 = arith.cmpi eq, %arg1, %c0_i32_57 : i32
    %93 = arith.extui %92 : i1 to i32
    %c0_i32_58 = arith.constant 0 : i32
    %94 = arith.cmpi ne, %93, %c0_i32_58 : i32
    scf.if %94 {
      %c0_59 = arith.constant 0 : index
      %c0_60 = arith.constant 0 : index
      %95 = vector.load %arg5[%c0_59, %c0_60] : memref<8x128xf32, #tpu.memory_space<vmem>>, vector<8x128xf32>
      %c0_61 = arith.constant 0 : index
      %c0_62 = arith.constant 0 : index
      %c0_63 = arith.constant 0 : index
      %c0_64 = arith.constant 0 : index
      %96 = vector.load %arg4[%c0_61, %c0_62, %c0_63, %c0_64] : memref<1x5x8x128xf32, #tpu.memory_space<vmem>>, vector<1x1x8x128xf32>
      %97 = vector.shape_cast %96 : vector<1x1x8x128xf32> to vector<8x128xf32>
      %98 = vector.shape_cast %95 : vector<8x128xf32> to vector<1x1x8x128xf32>
      tpu.vector_store %arg4[%c0_61, %c0_62, %c0_63, %c0_64], %98 {strides = array<i32>} : memref<1x5x8x128xf32, #tpu.memory_space<vmem>>, vector<1x1x8x128xf32>,
      %c0_65 = arith.constant 0 : index
      %c0_66 = arith.constant 0 : index
      %99 = vector.load %arg6[%c0_65, %c0_66] : memref<8x128xf32, #tpu.memory_space<vmem>>, vector<8x128xf32>
      %c0_67 = arith.constant 0 : index
      %c1 = arith.constant 1 : index
      %c0_68 = arith.constant 0 : index
      %c0_69 = arith.constant 0 : index
      %100 = vector.load %arg4[%c0_67, %c1, %c0_68, %c0_69] : memref<1x5x8x128xf32, #tpu.memory_space<vmem>>, vector<1x1x8x128xf32>
      %101 = vector.shape_cast %100 : vector<1x1x8x128xf32> to vector<8x128xf32>
      %102 = vector.shape_cast %99 : vector<8x128xf32> to vector<1x1x8x128xf32>
      tpu.vector_store %arg4[%c0_67, %c1, %c0_68, %c0_69], %102 {strides = array<i32>} : memref<1x5x8x128xf32, #tpu.memory_space<vmem>>, vector<1x1x8x128xf32>,
      %c0_70 = arith.constant 0 : index
      %c0_71 = arith.constant 0 : index
      %103 = vector.load %arg7[%c0_70, %c0_71] : memref<8x128xf32, #tpu.memory_space<vmem>>, vector<8x128xf32>
      %c0_72 = arith.constant 0 : index
      %c2 = arith.constant 2 : index
      %c0_73 = arith.constant 0 : index
      %c0_74 = arith.constant 0 : index
      %104 = vector.load %arg4[%c0_72, %c2, %c0_73, %c0_74] : memref<1x5x8x128xf32, #tpu.memory_space<vmem>>, vector<1x1x8x128xf32>
      %105 = vector.shape_cast %104 : vector<1x1x8x128xf32> to vector<8x128xf32>
      %106 = vector.shape_cast %103 : vector<8x128xf32> to vector<1x1x8x128xf32>
      tpu.vector_store %arg4[%c0_72, %c2, %c0_73, %c0_74], %106 {strides = array<i32>} : memref<1x5x8x128xf32, #tpu.memory_space<vmem>>, vector<1x1x8x128xf32>,
      %c0_75 = arith.constant 0 : index
      %c0_76 = arith.constant 0 : index
      %107 = vector.load %arg8[%c0_75, %c0_76] : memref<8x128xf32, #tpu.memory_space<vmem>>, vector<8x128xf32>
      %c0_77 = arith.constant 0 : index
      %c3 = arith.constant 3 : index
      %c0_78 = arith.constant 0 : index
      %c0_79 = arith.constant 0 : index
      %108 = vector.load %arg4[%c0_77, %c3, %c0_78, %c0_79] : memref<1x5x8x128xf32, #tpu.memory_space<vmem>>, vector<1x1x8x128xf32>
      %109 = vector.shape_cast %108 : vector<1x1x8x128xf32> to vector<8x128xf32>
      %110 = vector.shape_cast %107 : vector<8x128xf32> to vector<1x1x8x128xf32>
      tpu.vector_store %arg4[%c0_77, %c3, %c0_78, %c0_79], %110 {strides = array<i32>} : memref<1x5x8x128xf32, #tpu.memory_space<vmem>>, vector<1x1x8x128xf32>,
      %c0_80 = arith.constant 0 : index
      %c0_81 = arith.constant 0 : index
      %111 = vector.load %arg9[%c0_80, %c0_81] : memref<8x128xf32, #tpu.memory_space<vmem>>, vector<8x128xf32>
      %c0_82 = arith.constant 0 : index
      %c4 = arith.constant 4 : index
      %c0_83 = arith.constant 0 : index
      %c0_84 = arith.constant 0 : index
      %112 = vector.load %arg4[%c0_82, %c4, %c0_83, %c0_84] : memref<1x5x8x128xf32, #tpu.memory_space<vmem>>, vector<1x1x8x128xf32>
      %113 = vector.shape_cast %112 : vector<1x1x8x128xf32> to vector<8x128xf32>
      %114 = vector.shape_cast %111 : vector<8x128xf32> to vector<1x1x8x128xf32>
      tpu.vector_store %arg4[%c0_82, %c4, %c0_83, %c0_84], %114 {strides = array<i32>} : memref<1x5x8x128xf32, #tpu.memory_space<vmem>>, vector<1x1x8x128xf32>,
    } else {
    }
    return
  }
  func.func @transform_0(%arg0: i32, %arg1: i32) -> (i32, i32, i32) {
    %c1_i32 = arith.constant 1 : i32
    %0 = arith.muli %arg0, %c1_i32 : i32
    %1 = arith.addi %0, %arg1 : i32
    %c0_i32 = arith.constant 0 : i32
    %2 = arith.minsi %1, %c0_i32 : i32
    %c0_i32_0 = arith.constant 0 : i32
    %c0_i32_1 = arith.constant 0 : i32
    %c0_i32_2 = arith.constant 0 : i32
    return %c0_i32_0, %2, %c0_i32_1 : i32, i32, i32
  }
  func.func @transform_1(%arg0: i32, %arg1: i32) -> (i32, i32, i32) {
    %c1_i32 = arith.constant 1 : i32
    %0 = arith.muli %arg0, %c1_i32 : i32
    %1 = arith.addi %0, %arg1 : i32
    %c0_i32 = arith.constant 0 : i32
    %2 = arith.minsi %1, %c0_i32 : i32
    %c0_i32_0 = arith.constant 0 : i32
    %c0_i32_1 = arith.constant 0 : i32
    %c0_i32_2 = arith.constant 0 : i32
    return %c0_i32_0, %2, %c0_i32_1 : i32, i32, i32
  }
  func.func @transform_2(%arg0: i32, %arg1: i32) -> (i32, i32, i32, i32) {
    %c0_i32 = arith.constant 0 : i32
    %c0_i32_0 = arith.constant 0 : i32
    %c0_i32_1 = arith.constant 0 : i32
    %c0_i32_2 = arith.constant 0 : i32
    return %arg0, %c0_i32, %c0_i32_0, %c0_i32_1 : i32, i32, i32, i32
  }
}

</mosaic_0001>

<bundles_post_ra>
// kernel: tpu_custom_call.1
= control target key start
LH: loop header
LB: loop body
LE: loop exit
PB: predicated region body
PF: predicated region fallthrough
CT: control target
= control target key end

     0   :  { %7 = vsyncpa [#allocation8], 0  ;;  %s351_s0 = inlined_call_operand.hbm [shape: f32[2,8,128], index: 0, kind: input, shape index: {}]   ;;  %s352_s1 = inlined_call_operand.hbm [shape: s32[2,8,128], index: 1, kind: input, shape index: {}]   ;;  %s353_s2 = inlined_call_operand.hbm [shape: f32[1,5,8,128], index: 2, kind: output, shape index: {}]  }
   0x1   :  { %8 = vsyncpa [#allocation11], 0 }
   0x2   :  { %9 = vsyncpa [#allocation9], 0  ;;  %s19_s11 = sshll.u32 %s351_s0, 4  ;;  %s292_s12 = smov [#allocation7]   ;;  %s20_s11 = int_to_ptr.hbm [resolvable:$true] %s19_s11 }
   0x3   :  { %s21_s13 = sshll.u32 %s292_s12, 4  ;;  %s37_s16 = sshll.u32 %s352_s1, 4  ;;  %s22_s13 = int_to_ptr.vmem [resolvable:$true] %s21_s13  ;;  %s38_s16 = int_to_ptr.hbm [resolvable:$true] %s37_s16 }
   0x4   :  { %s293_s17 = smov 128   ;;  %s294_s18 = smov 8  }
   0x5   :  { %27 = dma.hbm_to_vmem [thread:$0]  %s20_s11, 256, %s22_s13, [#allocation8], %s293_s17, %s293_s17, %s294_s18  }
   0x6   :  { %s295_s19 = smov [#allocation10]  }
   0x7   :  { %s39_s20 = sshll.u32 %s295_s19, 4  ;;  %s40_s20 = int_to_ptr.vmem [resolvable:$true] %s39_s20 }
   0x8   :  { %45 = dma.hbm_to_vmem [thread:$0]  %s38_s16, 256, %s40_s20, [#allocation11], %s293_s17, %s293_s17, %s294_s18  }
   0x9   :  { %286 = dma.done.wait [#allocation8], 256  }
   0xa   :  { %287 = vsyncadd [#allocation8], 4294967040 }
   0xb   :  { %288 = dma.done.wait [#allocation11], 256  }
   0xc   :  { %289 = vsyncadd [#allocation11], 4294967040  ;;  %v69_v0 = vld [vmem:[#allocation7] sm:$0xff]  ;;  %v70_v1 = vld [vmem:[#allocation7 + $0x8] sm:$0xff]  ;;  %v296_v9 = vmov 0.0   ;;  %s297_s0 = smov [#allocation12]  }
   0xd   :  { %v71_v2 = vld [vmem:[#allocation10] sm:$0xff]  ;;  %v72_v3 = vld [vmem:[#allocation10 + $0x8] sm:$0xff]  ;;  %v73_v4 = vmul.f32 2.0, %v69_v0  ;;  %v74_v5 = vmul.f32 2.0, %v70_v1  ;;  %vm117_vm8 = vcmp.gt.f32.partialorder %v69_v0, 0.5  ;;  %vm118_vm9 = vcmp.gt.f32.partialorder %v70_v1, 0.5 }
   0xe   :  { %vm95_vm0 = vcmp.eq.s32.totalorder %v71_v2, 0  ;;  %vm97_vm1 = vcmp.ne.s32.totalorder %v71_v2, 0  ;;  %vm96_vm2 = vcmp.eq.s32.totalorder %v72_v3, 0  ;;  %vm98_vm3 = vcmp.ne.s32.totalorder %v72_v3, 0  ;;  %s178_s1 = sshll.u32 %s297_s0, 4  ;;  %s180_s23 = sshll.u32 %s353_s2, 4  ;;  %s179_s1 = int_to_ptr.vmem [resolvable:$true] %s178_s1  ;;  %s181_s23 = int_to_ptr.hbm [resolvable:$true] %s180_s23 }
   0xf   :  { %vm99_vm4 = vcmp.lt.s32.totalorder %v71_v2, 2  ;;  %vm100_vm5 = vcmp.lt.s32.totalorder %v72_v3, 2  ;;  %v198_v6 = vadd.f32 -1.0, %v73_v4  ;;  %v199_v7 = vadd.f32 -1.0, %v74_v5 }
  0x10   :  { %vm325_vm6 = vmand %vm97_vm1, %vm99_vm4  ;;  %v111_v10 = vsel %vm95_vm0, 1.0, %v296_v9  ;;  %v112_v11 = vsel %vm96_vm2, 1.0, %v296_v9  ;;  %v119_v18 = vsel %vm117_vm8, 1.0, %v296_v9  ;;  %v120_v19 = vsel %vm118_vm9, 1.0, %v296_v9 }
  0x11   :  { %vm331_vm7 = vmand %vm98_vm3, %vm100_vm5  ;;  %v113_v13 = vadd.f32 %v112_v11, %v111_v10  ;;  %v114_v14 = vsel %vm325_vm6, 1.0, %v296_v9  ;;  %v79_v15 = vand.u32 2147483647, %v198_v6  ;;  %v80_v16 = vand.u32 2147483647, %v199_v7 }
  0x12   :  { %v115_v17 = vsel %vm331_vm7, 1.0, %v296_v9  ;;  %v121_v23 = vadd.f32 %v120_v19, %v119_v18  ;;  %v77_v34 = vmax.f32 %v198_v6, 0.0  ;;  %v78_v36 = vmax.f32 %v199_v7, 0.0 }
  0x13   :  { %167 = vst [vmem:[#allocation12 + $0x10] sm:$0xff] %v113_v13  ;;  %v81_v20 = vsub.f32 0.0, %v79_v15  ;;  %v82_v21 = vsub.f32 0.0, %v80_v16  ;;  %v116_v22 = vadd.f32 %v115_v17, %v114_v14 }
  0x14   :  { %v134_v27 = vsub.f32 2.0, %v121_v23 }
  0x15   :  { %v83_v24 = vmul.f32 1.442695, %v81_v20  ;;  %v85_v25 = vmul.f32 1.442695, %v82_v21  ;;  %170 = vst [vmem:[#allocation12 + $0x18] sm:$0xff] %v116_v22  ;;  %v133_v26 = vmul.f32 %v121_v23, %v116_v22 }
  0x16   :  { %v135_v28 = vmul.f32 %v134_v27, %v113_v13 }
  0x17   :  { %206 = vpow2.f32 %v83_v24 }
  0x18   :  { %208 = vpow2.f32 %v85_v25  ;;  %v136_v29 = vadd.f32 %v135_v28, %v133_v26 }
  0x1a   :  { %173 = vst [vmem:[#allocation12 + $0x20] sm:$0xff] %v136_v29 }
  0x1d   :  { %v207_v30 = vpop.eup %206 }
  0x1e   :  { %v209_v31 = vpop.eup %208  ;;  %v87_v32 = vadd.f32 1.0, %v207_v30 }
  0x1f   :  { %v88_v33 = vadd.f32 1.0, %v209_v31 }
  0x20   :  { %210 = vlog2.f32 %v87_v32 }
  0x21   :  { %212 = vlog2.f32 %v88_v33 }
  0x26   :  { %v211_v35 = vpop.eup %210 }
  0x27   :  { %v213_v37 = vpop.eup %212  ;;  %v90_v38 = vmul.f32 0.6931472, %v211_v35 }
  0x28   :  { %v92_v39 = vmul.f32 0.6931472, %v213_v37 }
  0x29   :  { %v93_v40 = vadd.f32 %v90_v38, %v77_v34 }
  0x2a   :  { %v94_v41 = vadd.f32 %v92_v39, %v78_v36 }
  0x2b   :  { %v103_v42 = vsel %vm95_vm0, %v93_v40, 0.0  ;;  %v106_v43 = vsub.f32 %v93_v40, %v198_v6 }
  0x2c   :  { %v104_v44 = vsel %vm96_vm2, %v94_v41, 0.0  ;;  %v107_v45 = vsub.f32 %v94_v41, %v199_v7 }
  0x2d   :  { %v105_v46 = vadd.f32 %v104_v44, %v103_v42  ;;  %v108_v47 = vsel %vm325_vm6, %v106_v43, 0.0 }
  0x2e   :  { %v109_v48 = vsel %vm331_vm7, %v107_v45, 0.0 }
  0x2f   :  { %161 = vst [vmem:[#allocation12] sm:$0xff] %v105_v46  ;;  %v110_v49 = vadd.f32 %v109_v48, %v108_v47 }
  0x31   :  { %164 = vst [vmem:[#allocation12 + $0x8] sm:$0xff] %v110_v49 }
  0x32   :  { %186 = dma.vmem_to_hbm [thread:$0]  %s179_s1, 640, %s181_s23, [#allocation9], %s293_s17, %s293_s17, %s294_s18  }
  0x33   :  { %290 = dma.done.wait [#allocation9], 640  }
  0x34   :  { %291 = vsyncadd [#allocation9], 4294966656 }
  0x35   :  { %191 = vsyncpa [#allocation8], 1 }
  0x36   :  { %192 = vsyncpa [#allocation11], 1 }
  0x37   :  { %193 = vsyncpa [#allocation9], 1 }

</bundles_post_ra>
